<compile_context>
chip_gen: v7x
topology: tpu7x:2x2x1
jax: 0.10.0
libtpu: 0.0.40
codegen_flags: <defaults>
</compile_context>

<pallas_src>
import math

import jax
import jax.numpy as jnp
from jax import lax
from jax.experimental import pallas as pl
from jax.experimental.pallas import tpu as pltpu


# ------------------------------ Pallas kernel -------------------------------

def _mat_gru_cell_kernel(wur_ref, uur_ref, bur_ref,   # (R,2R) (R,2R) (cols,2R)
                         wh_ref, uh_ref, bh_ref,      # (R,R)  (R,R)  (cols,R)
                         idx_ref, s_ref,              # SMEM (k,) int32 / f32
                         q_ref,                       # (cols, R) == prev_Q^T
                         z_ref,                       # (N, R)    prev_Z (VMEM)
                         out_ref):                    # (cols, R) == new_Q^T
    cols, R = out_ref.shape
    k = idx_ref.shape[0]                              # == cols (static)

    # Gather the top-k node embeddings and scale each row by tanh(score).
    # Indices/scores live in SMEM; prev_Z is VMEM-resident so each row is a
    # cheap dynamic-slice vector load (k is small & static -> unrolled).
    rows = []
    for i in range(k):
        rows.append(z_ref[pl.ds(idx_ref[i], 1), :] * s_ref[i])       # (1, R)
    x = jnp.concatenate(rows, axis=0)                 # (k, R)  node-major z_topk^T
    h = q_ref[...]                                    # (cols, R) prev_Q^T

    # update & reset gates, fused along the output dim (one dot pair):
    #   [upd^T | rst^T] = sigmoid(x@[Wu^T|Wr^T] + h@[Uu^T|Ur^T] + [bu^T|br^T])
    ur = jax.nn.sigmoid(
        jnp.dot(x, wur_ref[...], preferred_element_type=jnp.float32)
        + jnp.dot(h, uur_ref[...], preferred_element_type=jnp.float32)
        + bur_ref[...])                               # (cols, 2R)
    upd = ur[:, :R]
    rst = ur[:, R:]

    # htilda gate on (reset * prev_Q):
    hcap = jnp.tanh(
        jnp.dot(x, wh_ref[...], preferred_element_type=jnp.float32)
        + jnp.dot(rst * h, uh_ref[...], preferred_element_type=jnp.float32)
        + bh_ref[...])                                # (cols, R)

    out_ref[...] = ((1.0 - upd) * h + upd * hcap).astype(out_ref.dtype)


# ------------------------------ JAX wrappers ---------------------------------

def _vmem_spec(shape):
    # whole-array block, trivial index map (grid-less call)
    return pl.BlockSpec(shape, lambda: (0,) * len(shape))


_SMEM_SPEC = pl.BlockSpec(memory_space=pltpu.MemorySpace.SMEM)


def _gru_gates(packed, idx, s_tanh, q_t, prev_Z):
    cols, R = q_t.shape
    N = prev_Z.shape[0]
    return pl.pallas_call(
        _mat_gru_cell_kernel,
        out_shape=jax.ShapeDtypeStruct((cols, R), jnp.float32),
        in_specs=[_vmem_spec((R, 2 * R)),      # Wur_t
                  _vmem_spec((R, 2 * R)),      # Uur_t
                  _vmem_spec((cols, 2 * R)),   # bur_t
                  _vmem_spec((R, R)),          # Wh_t
                  _vmem_spec((R, R)),          # Uh_t
                  _vmem_spec((cols, R)),       # bh_t
                  _SMEM_SPEC,                  # top-k indices (SMEM)
                  _SMEM_SPEC,                  # tanh(scores[top-k]) (SMEM)
                  _vmem_spec((cols, R)),       # prev_Q^T
                  _vmem_spec((N, R))],         # prev_Z (full array in VMEM)
        out_specs=_vmem_spec((cols, R)),
    )(packed["Wur_t"], packed["Uur_t"], packed["bur_t"],
      packed["Wh_t"], packed["Uh_t"], packed["bh_t"],
      idx, s_tanh, q_t, prev_Z)


def _topk_select(prev_Z, scorer, mask, k):
    # TopK.forward scoring.  The data-dependent sort (torch .topk +
    # pad_with_last_val) has no clean Pallas equivalent and stays in JAX; the
    # tiny scorer dot is done here too so XLA fuses it with the mask add/top_k.
    norm = jnp.sqrt(jnp.sum(scorer * scorer))
    scores = (jnp.dot(prev_Z, scorer, precision=lax.Precision.HIGHEST) / norm
              + mask)                                     # (N, 1)
    vals, idx = lax.top_k(scores.reshape(-1), k)          # descending
    # torch drops vals == -inf then pads with the last valid index; the
    # static-shape equivalent overwrites invalid slots with the last valid one.
    valid = vals > -jnp.inf
    last = jnp.maximum(jnp.sum(valid.astype(jnp.int32)) - 1, 0)
    idx = jnp.where(valid, idx, idx[last]).astype(jnp.int32)
    svals = jnp.where(valid, vals, vals[last])
    # TODO(synk): if *every* node is masked (count == 0) torch's variable-length
    # drop-then-pad path diverges; this static-shape version falls back to idx[0].
    return idx, jnp.tanh(svals)


def mat_gru_cell_forward(packed, prev_Q, prev_Z, mask):
    rows, cols = prev_Q.shape
    idx, s_tanh = _topk_select(prev_Z, packed["scorer"], mask, cols)
    # Node-major layout inside the kernel.  A multi-timestep EvolveGCN loop
    # should keep Q in (cols, rows) layout end-to-end so these two tiny
    # transposes disappear.
    new_q_t = _gru_gates(packed, idx, s_tanh, prev_Q.T, prev_Z)
    return new_q_t.T


# ------------------------- deterministic param init --------------------------

def init_params(key, rows, cols):
    keys = jax.random.split(key, 7)
    stdv = 1.0 / math.sqrt(rows)   # gates use size(1)=rows; scorer uses size(0)=rows

    def u(k, shape):
        return jax.random.uniform(k, shape, jnp.float32, minval=-stdv, maxval=stdv)

    return {
        "W_u": u(keys[0], (rows, rows)), "U_u": u(keys[1], (rows, rows)),
        "b_u": jnp.zeros((rows, cols), jnp.float32),
        "W_r": u(keys[2], (rows, rows)), "U_r": u(keys[3], (rows, rows)),
        "b_r": jnp.zeros((rows, cols), jnp.float32),
        "W_h": u(keys[4], (rows, rows)), "U_h": u(keys[5], (rows, rows)),
        "b_h": jnp.zeros((rows, cols), jnp.float32),
        "scorer": u(keys[6], (rows, 1)),
    }


def pack_params(p):
    """One-time transpose/concat packing for the node-major fused kernel."""
    return {
        "Wur_t": jnp.concatenate([p["W_u"].T, p["W_r"].T], axis=1),   # (R, 2R)
        "Uur_t": jnp.concatenate([p["U_u"].T, p["U_r"].T], axis=1),   # (R, 2R)
        "bur_t": jnp.concatenate([p["b_u"].T, p["b_r"].T], axis=1),   # (cols, 2R)
        "Wh_t": p["W_h"].T, "Uh_t": p["U_h"].T, "bh_t": p["b_h"].T,
        "scorer": p["scorer"],                                        # (R, 1)
    }


# ------------------------------ plain-JAX reference --------------------------

def reference_forward(p, prev_Q, prev_Z, mask):
    """Plain-JAX replica of the torch module (HIGHEST-precision dots)."""
    cols = prev_Q.shape[1]
    idx, s_tanh = _topk_select(prev_Z, p["scorer"], mask, cols)
    x = (prev_Z[idx] * s_tanh[:, None]).T                  # z_topk: (rows, cols)
    hp = lax.Precision.HIGHEST

    def gate(W, U, b, act, xx, hh):
        return act(jnp.dot(W, xx, precision=hp) + jnp.dot(U, hh, precision=hp) + b)

    upd = gate(p["W_u"], p["U_u"], p["b_u"], jax.nn.sigmoid, x, prev_Q)
    rst = gate(p["W_r"], p["U_r"], p["b_r"], jax.nn.sigmoid, x, prev_Q)
    hcap = gate(p["W_h"], p["U_h"], p["b_h"], jnp.tanh, x, rst * prev_Q)
    return (1.0 - upd) * prev_Q + upd * hcap


# ---------------------------------- main -------------------------------------

if __name__ == "__main__":
    rows, cols, num_nodes = 32, 16, 64     # args.rows, args.cols, #nodes

    key = jax.random.PRNGKey(0)
    k_params, k_q, k_z = jax.random.split(key, 3)

    params = init_params(k_params, rows, cols)
    packed = pack_params(params)
    prev_Q = jax.random.normal(k_q, (rows, cols), jnp.float32)
    prev_Z = jax.random.normal(k_z, (num_nodes, rows), jnp.float32)
    mask = jnp.zeros((num_nodes, 1), jnp.float32)   # 0 = keep; -inf masks a node

    fwd = jax.jit(mat_gru_cell_forward)
    new_Q = fwd(packed, prev_Q, prev_Z, mask)
    jax.block_until_ready(new_Q)

    assert new_Q.shape == (rows, cols)
    assert bool(jnp.all(jnp.isfinite(new_Q)))

    ref = reference_forward(params, prev_Q, prev_Z, mask)
    assert bool(jnp.allclose(new_Q, ref, rtol=2e-3, atol=2e-3)), \
        float(jnp.max(jnp.abs(new_Q - ref)))
    print("KERNEL_OK")
</pallas_src>

<mosaic_0001>
module attributes {stable_mosaic.version = 11 : i64} {
  func.func @_mat_gru_cell_kernel(%arg0: memref<32x64xf32, #tpu.memory_space<vmem>>, %arg1: memref<32x64xf32, #tpu.memory_space<vmem>>, %arg2: memref<16x64xf32, #tpu.memory_space<vmem>>, %arg3: memref<32x32xf32, #tpu.memory_space<vmem>>, %arg4: memref<32x32xf32, #tpu.memory_space<vmem>>, %arg5: memref<16x32xf32, #tpu.memory_space<vmem>>, %arg6: memref<16xi32, #tpu.memory_space<smem>>, %arg7: memref<16xf32, #tpu.memory_space<smem>>, %arg8: memref<16x32xf32, #tpu.memory_space<vmem>>, %arg9: memref<64x32xf32, #tpu.memory_space<vmem>>, %arg10: memref<16x32xf32, #tpu.memory_space<vmem>>) attributes {dimension_semantics = [], scalar_prefetch = 0 : i64, scratch_operands = 0 : i64, tpu.core_type = #tpu.core_type<tc>} {
    %c0 = arith.constant 0 : index
    %0 = memref.load %arg6[%c0] : memref<16xi32, #tpu.memory_space<smem>>
    %1 = arith.index_cast %0 : i32 to index
    %c0_0 = arith.constant 0 : index
    %2 = vector.load %arg9[%1, %c0_0] : memref<64x32xf32, #tpu.memory_space<vmem>>, vector<1x32xf32>
    %c0_1 = arith.constant 0 : index
    %3 = memref.load %arg7[%c0_1] : memref<16xf32, #tpu.memory_space<smem>>
    %4 = vector.broadcast %3 : f32 to vector<1x32xf32>
    %5 = arith.mulf %2, %4 : vector<1x32xf32>
    %c1 = arith.constant 1 : index
    %6 = memref.load %arg6[%c1] : memref<16xi32, #tpu.memory_space<smem>>
    %7 = arith.index_cast %6 : i32 to index
    %c0_2 = arith.constant 0 : index
    %8 = vector.load %arg9[%7, %c0_2] : memref<64x32xf32, #tpu.memory_space<vmem>>, vector<1x32xf32>
    %c1_3 = arith.constant 1 : index
    %9 = memref.load %arg7[%c1_3] : memref<16xf32, #tpu.memory_space<smem>>
    %10 = vector.broadcast %9 : f32 to vector<1x32xf32>
    %11 = arith.mulf %8, %10 : vector<1x32xf32>
    %c2 = arith.constant 2 : index
    %12 = memref.load %arg6[%c2] : memref<16xi32, #tpu.memory_space<smem>>
    %13 = arith.index_cast %12 : i32 to index
    %c0_4 = arith.constant 0 : index
    %14 = vector.load %arg9[%13, %c0_4] : memref<64x32xf32, #tpu.memory_space<vmem>>, vector<1x32xf32>
    %c2_5 = arith.constant 2 : index
    %15 = memref.load %arg7[%c2_5] : memref<16xf32, #tpu.memory_space<smem>>
    %16 = vector.broadcast %15 : f32 to vector<1x32xf32>
    %17 = arith.mulf %14, %16 : vector<1x32xf32>
    %c3 = arith.constant 3 : index
    %18 = memref.load %arg6[%c3] : memref<16xi32, #tpu.memory_space<smem>>
    %19 = arith.index_cast %18 : i32 to index
    %c0_6 = arith.constant 0 : index
    %20 = vector.load %arg9[%19, %c0_6] : memref<64x32xf32, #tpu.memory_space<vmem>>, vector<1x32xf32>
    %c3_7 = arith.constant 3 : index
    %21 = memref.load %arg7[%c3_7] : memref<16xf32, #tpu.memory_space<smem>>
    %22 = vector.broadcast %21 : f32 to vector<1x32xf32>
    %23 = arith.mulf %20, %22 : vector<1x32xf32>
    %c4 = arith.constant 4 : index
    %24 = memref.load %arg6[%c4] : memref<16xi32, #tpu.memory_space<smem>>
    %25 = arith.index_cast %24 : i32 to index
    %c0_8 = arith.constant 0 : index
    %26 = vector.load %arg9[%25, %c0_8] : memref<64x32xf32, #tpu.memory_space<vmem>>, vector<1x32xf32>
    %c4_9 = arith.constant 4 : index
    %27 = memref.load %arg7[%c4_9] : memref<16xf32, #tpu.memory_space<smem>>
    %28 = vector.broadcast %27 : f32 to vector<1x32xf32>
    %29 = arith.mulf %26, %28 : vector<1x32xf32>
    %c5 = arith.constant 5 : index
    %30 = memref.load %arg6[%c5] : memref<16xi32, #tpu.memory_space<smem>>
    %31 = arith.index_cast %30 : i32 to index
    %c0_10 = arith.constant 0 : index
    %32 = vector.load %arg9[%31, %c0_10] : memref<64x32xf32, #tpu.memory_space<vmem>>, vector<1x32xf32>
    %c5_11 = arith.constant 5 : index
    %33 = memref.load %arg7[%c5_11] : memref<16xf32, #tpu.memory_space<smem>>
    %34 = vector.broadcast %33 : f32 to vector<1x32xf32>
    %35 = arith.mulf %32, %34 : vector<1x32xf32>
    %c6 = arith.constant 6 : index
    %36 = memref.load %arg6[%c6] : memref<16xi32, #tpu.memory_space<smem>>
    %37 = arith.index_cast %36 : i32 to index
    %c0_12 = arith.constant 0 : index
    %38 = vector.load %arg9[%37, %c0_12] : memref<64x32xf32, #tpu.memory_space<vmem>>, vector<1x32xf32>
    %c6_13 = arith.constant 6 : index
    %39 = memref.load %arg7[%c6_13] : memref<16xf32, #tpu.memory_space<smem>>
    %40 = vector.broadcast %39 : f32 to vector<1x32xf32>
    %41 = arith.mulf %38, %40 : vector<1x32xf32>
    %c7 = arith.constant 7 : index
    %42 = memref.load %arg6[%c7] : memref<16xi32, #tpu.memory_space<smem>>
    %43 = arith.index_cast %42 : i32 to index
    %c0_14 = arith.constant 0 : index
    %44 = vector.load %arg9[%43, %c0_14] : memref<64x32xf32, #tpu.memory_space<vmem>>, vector<1x32xf32>
    %c7_15 = arith.constant 7 : index
    %45 = memref.load %arg7[%c7_15] : memref<16xf32, #tpu.memory_space<smem>>
    %46 = vector.broadcast %45 : f32 to vector<1x32xf32>
    %47 = arith.mulf %44, %46 : vector<1x32xf32>
    %c8 = arith.constant 8 : index
    %48 = memref.load %arg6[%c8] : memref<16xi32, #tpu.memory_space<smem>>
    %49 = arith.index_cast %48 : i32 to index
    %c0_16 = arith.constant 0 : index
    %50 = vector.load %arg9[%49, %c0_16] : memref<64x32xf32, #tpu.memory_space<vmem>>, vector<1x32xf32>
    %c8_17 = arith.constant 8 : index
    %51 = memref.load %arg7[%c8_17] : memref<16xf32, #tpu.memory_space<smem>>
    %52 = vector.broadcast %51 : f32 to vector<1x32xf32>
    %53 = arith.mulf %50, %52 : vector<1x32xf32>
    %c9 = arith.constant 9 : index
    %54 = memref.load %arg6[%c9] : memref<16xi32, #tpu.memory_space<smem>>
    %55 = arith.index_cast %54 : i32 to index
    %c0_18 = arith.constant 0 : index
    %56 = vector.load %arg9[%55, %c0_18] : memref<64x32xf32, #tpu.memory_space<vmem>>, vector<1x32xf32>
    %c9_19 = arith.constant 9 : index
    %57 = memref.load %arg7[%c9_19] : memref<16xf32, #tpu.memory_space<smem>>
    %58 = vector.broadcast %57 : f32 to vector<1x32xf32>
    %59 = arith.mulf %56, %58 : vector<1x32xf32>
    %c10 = arith.constant 10 : index
    %60 = memref.load %arg6[%c10] : memref<16xi32, #tpu.memory_space<smem>>
    %61 = arith.index_cast %60 : i32 to index
    %c0_20 = arith.constant 0 : index
    %62 = vector.load %arg9[%61, %c0_20] : memref<64x32xf32, #tpu.memory_space<vmem>>, vector<1x32xf32>
    %c10_21 = arith.constant 10 : index
    %63 = memref.load %arg7[%c10_21] : memref<16xf32, #tpu.memory_space<smem>>
    %64 = vector.broadcast %63 : f32 to vector<1x32xf32>
    %65 = arith.mulf %62, %64 : vector<1x32xf32>
    %c11 = arith.constant 11 : index
    %66 = memref.load %arg6[%c11] : memref<16xi32, #tpu.memory_space<smem>>
    %67 = arith.index_cast %66 : i32 to index
    %c0_22 = arith.constant 0 : index
    %68 = vector.load %arg9[%67, %c0_22] : memref<64x32xf32, #tpu.memory_space<vmem>>, vector<1x32xf32>
    %c11_23 = arith.constant 11 : index
    %69 = memref.load %arg7[%c11_23] : memref<16xf32, #tpu.memory_space<smem>>
    %70 = vector.broadcast %69 : f32 to vector<1x32xf32>
    %71 = arith.mulf %68, %70 : vector<1x32xf32>
    %c12 = arith.constant 12 : index
    %72 = memref.load %arg6[%c12] : memref<16xi32, #tpu.memory_space<smem>>
    %73 = arith.index_cast %72 : i32 to index
    %c0_24 = arith.constant 0 : index
    %74 = vector.load %arg9[%73, %c0_24] : memref<64x32xf32, #tpu.memory_space<vmem>>, vector<1x32xf32>
    %c12_25 = arith.constant 12 : index
    %75 = memref.load %arg7[%c12_25] : memref<16xf32, #tpu.memory_space<smem>>
    %76 = vector.broadcast %75 : f32 to vector<1x32xf32>
    %77 = arith.mulf %74, %76 : vector<1x32xf32>
    %c13 = arith.constant 13 : index
    %78 = memref.load %arg6[%c13] : memref<16xi32, #tpu.memory_space<smem>>
    %79 = arith.index_cast %78 : i32 to index
    %c0_26 = arith.constant 0 : index
    %80 = vector.load %arg9[%79, %c0_26] : memref<64x32xf32, #tpu.memory_space<vmem>>, vector<1x32xf32>
    %c13_27 = arith.constant 13 : index
    %81 = memref.load %arg7[%c13_27] : memref<16xf32, #tpu.memory_space<smem>>
    %82 = vector.broadcast %81 : f32 to vector<1x32xf32>
    %83 = arith.mulf %80, %82 : vector<1x32xf32>
    %c14 = arith.constant 14 : index
    %84 = memref.load %arg6[%c14] : memref<16xi32, #tpu.memory_space<smem>>
    %85 = arith.index_cast %84 : i32 to index
    %c0_28 = arith.constant 0 : index
    %86 = vector.load %arg9[%85, %c0_28] : memref<64x32xf32, #tpu.memory_space<vmem>>, vector<1x32xf32>
    %c14_29 = arith.constant 14 : index
    %87 = memref.load %arg7[%c14_29] : memref<16xf32, #tpu.memory_space<smem>>
    %88 = vector.broadcast %87 : f32 to vector<1x32xf32>
    %89 = arith.mulf %86, %88 : vector<1x32xf32>
    %c15 = arith.constant 15 : index
    %90 = memref.load %arg6[%c15] : memref<16xi32, #tpu.memory_space<smem>>
    %91 = arith.index_cast %90 : i32 to index
    %c0_30 = arith.constant 0 : index
    %92 = vector.load %arg9[%91, %c0_30] : memref<64x32xf32, #tpu.memory_space<vmem>>, vector<1x32xf32>
    %c15_31 = arith.constant 15 : index
    %93 = memref.load %arg7[%c15_31] : memref<16xf32, #tpu.memory_space<smem>>
    %94 = vector.broadcast %93 : f32 to vector<1x32xf32>
    %95 = arith.mulf %92, %94 : vector<1x32xf32>
    %96 = tpu.concatenate %5, %11, %17, %23, %29, %35, %41, %47, %53, %59, %65, %71, %77, %83, %89, %95 in 0 : vector<1x32xf32>, vector<1x32xf32>, vector<1x32xf32>, vector<1x32xf32>, vector<1x32xf32>, vector<1x32xf32>, vector<1x32xf32>, vector<1x32xf32>, vector<1x32xf32>, vector<1x32xf32>, vector<1x32xf32>, vector<1x32xf32>, vector<1x32xf32>, vector<1x32xf32>, vector<1x32xf32>, vector<1x32xf32> -> vector<16x32xf32>
    %c0_32 = arith.constant 0 : index
    %c0_33 = arith.constant 0 : index
    %97 = vector.load %arg8[%c0_32, %c0_33] : memref<16x32xf32, #tpu.memory_space<vmem>>, vector<16x32xf32>
    %c0_34 = arith.constant 0 : index
    %c0_35 = arith.constant 0 : index
    %98 = vector.load %arg0[%c0_34, %c0_35] : memref<32x64xf32, #tpu.memory_space<vmem>>, vector<32x64xf32>
    %cst = arith.constant dense<0.000000e+00> : vector<16x64xf32>
    %99 = tpu.matmul %96, %98, %cst {dimension_numbers = #tpu.dot_dimension_numbers<[1], [0], [0], [1], [0, 0, 1, 1], [], []>} : vector<16x32xf32>, vector<32x64xf32>, vector<16x64xf32> -> vector<16x64xf32>
    %c0_36 = arith.constant 0 : index
    %c0_37 = arith.constant 0 : index
    %100 = vector.load %arg1[%c0_36, %c0_37] : memref<32x64xf32, #tpu.memory_space<vmem>>, vector<32x64xf32>
    %cst_38 = arith.constant dense<0.000000e+00> : vector<16x64xf32>
    %101 = tpu.matmul %97, %100, %cst_38 {dimension_numbers = #tpu.dot_dimension_numbers<[1], [0], [0], [1], [0, 0, 1, 1], [], []>} : vector<16x32xf32>, vector<32x64xf32>, vector<16x64xf32> -> vector<16x64xf32>
    %102 = arith.addf %99, %101 : vector<16x64xf32>
    %c0_39 = arith.constant 0 : index
    %c0_40 = arith.constant 0 : index
    %103 = vector.load %arg2[%c0_39, %c0_40] : memref<16x64xf32, #tpu.memory_space<vmem>>, vector<16x64xf32>
    %104 = arith.addf %102, %103 : vector<16x64xf32>
    %105 = arith.negf %104 : vector<16x64xf32>
    %106 = math.exp %105 : vector<16x64xf32>
    %cst_41 = arith.constant 1.000000e+00 : f32
    %107 = vector.broadcast %cst_41 : f32 to vector<16x64xf32>
    %108 = arith.addf %107, %106 : vector<16x64xf32>
    %109 = arith.divf %107, %108 : vector<16x64xf32>
    %110 = vector.extract_strided_slice %109 {offsets = [0, 0], sizes = [16, 32], strides = [1, 1]} : vector<16x64xf32> to vector<16x32xf32>
    %111 = vector.extract_strided_slice %109 {offsets = [0, 32], sizes = [16, 32], strides = [1, 1]} : vector<16x64xf32> to vector<16x32xf32>
    %c0_42 = arith.constant 0 : index
    %c0_43 = arith.constant 0 : index
    %112 = vector.load %arg3[%c0_42, %c0_43] : memref<32x32xf32, #tpu.memory_space<vmem>>, vector<32x32xf32>
    %cst_44 = arith.constant dense<0.000000e+00> : vector<16x32xf32>
    %113 = tpu.matmul %96, %112, %cst_44 {dimension_numbers = #tpu.dot_dimension_numbers<[1], [0], [0], [1], [0, 0, 1, 1], [], []>} : vector<16x32xf32>, vector<32x32xf32>, vector<16x32xf32> -> vector<16x32xf32>
    %114 = arith.mulf %111, %97 : vector<16x32xf32>
    %c0_45 = arith.constant 0 : index
    %c0_46 = arith.constant 0 : index
    %115 = vector.load %arg4[%c0_45, %c0_46] : memref<32x32xf32, #tpu.memory_space<vmem>>, vector<32x32xf32>
    %cst_47 = arith.constant dense<0.000000e+00> : vector<16x32xf32>
    %116 = tpu.matmul %114, %115, %cst_47 {dimension_numbers = #tpu.dot_dimension_numbers<[1], [0], [0], [1], [0, 0, 1, 1], [], []>} : vector<16x32xf32>, vector<32x32xf32>, vector<16x32xf32> -> vector<16x32xf32>
    %117 = arith.addf %113, %116 : vector<16x32xf32>
    %c0_48 = arith.constant 0 : index
    %c0_49 = arith.constant 0 : index
    %118 = vector.load %arg5[%c0_48, %c0_49] : memref<16x32xf32, #tpu.memory_space<vmem>>, vector<16x32xf32>
    %119 = arith.addf %117, %118 : vector<16x32xf32>
    %120 = math.tanh %119 : vector<16x32xf32>
    %cst_50 = arith.constant 1.000000e+00 : f32
    %121 = vector.broadcast %cst_50 : f32 to vector<16x32xf32>
    %122 = arith.subf %121, %110 : vector<16x32xf32>
    %123 = arith.mulf %122, %97 : vector<16x32xf32>
    %124 = arith.mulf %110, %120 : vector<16x32xf32>
    %125 = arith.addf %123, %124 : vector<16x32xf32>
    %c0_51 = arith.constant 0 : index
    %c0_52 = arith.constant 0 : index
    %126 = vector.load %arg10[%c0_51, %c0_52] : memref<16x32xf32, #tpu.memory_space<vmem>>, vector<16x32xf32>
    tpu.vector_store %arg10[%c0_51, %c0_52], %125 {strides = array<i32>} : memref<16x32xf32, #tpu.memory_space<vmem>>, vector<16x32xf32>,
    return
  }
}

</mosaic_0001>

<bundles_post_ra>
// kernel: mat_gru_cell_forward.1
= control target key start
LH: loop header
LB: loop body
LE: loop exit
PB: predicated region body
PF: predicated region fallthrough
CT: control target
= control target key end

     0   :  { %15 = vsyncpa [#allocation4], 0  ;;  %s1133_s0 = inlined_call_operand.vmem [shape: f32[32,64], index: 0, kind: input, shape index: {}]   ;;  %s1134_s1 = inlined_call_operand.vmem [shape: f32[32,64], index: 1, kind: input, shape index: {}]   ;;  %s1135_s2 = inlined_call_operand.vmem [shape: f32[16,64], index: 2, kind: input, shape index: {}]   ;;  %s1136_s3 = inlined_call_operand.vmem [shape: f32[32,32], index: 3, kind: input, shape index: {}]   ;;  %s1137_s4 = inlined_call_operand.vmem [shape: f32[32,32], index: 4, kind: input, shape index: {}]   ;;  %s1138_s5 = inlined_call_operand.vmem [shape: f32[16,32], index: 5, kind: input, shape index: {}]   ;;  %s1139_s6 = inlined_call_operand.vmem [shape: s32[16], index: 6, kind: input, shape index: {}]   ;;  %s1140_s7 = inlined_call_operand.vmem [shape: f32[16], index: 7, kind: input, shape index: {}]   ;;  %s1141_s8 = inlined_call_operand.vmem [shape: f32[16,32], index: 8, kind: input, shape index: {}]   ;;  %s1142_s9 = inlined_call_operand.vmem [shape: f32[64,32], index: 9, kind: input, shape index: {}]   ;;  %s1143_s10 = inlined_call_operand.hbm [shape: f32[16,32], index: 10, kind: output, shape index: {}]  }
   0x1   :  { %16 = vsyncpa [#allocation6], 0 }
   0x2   :  { %17 = vsyncpa [#allocation3], 0  ;;  %s36_s15 = sshll.u32 %s1139_s6, 4  ;;  %s46_s18 = sshll.u32 %s1140_s7, 4  ;;  %s37_s15 = int_to_ptr.vmem [resolvable:$true] %s36_s15  ;;  %s47_s18 = int_to_ptr.vmem [resolvable:$true] %s46_s18 }
   0x3   :  { %s798_s19 = scalar_lea.vmem %s37_s15, 16  ;;  %p803_p1 = scmp.lt.s32.totalorder %s37_s15, %s37_s15 }
   0x4   :  { %p799_p0 = scmp.ne.s32.totalorder %s37_s15, %s798_s19  ;;  %p804_p2 = scmp.lt.s32.totalorder %s798_s19, %s798_s19 }
   0x6   :  { %p805_p3 = por %p804_p2, %p803_p1 }
   0x8   :  { %p806_p4 = pnand %p805_p3, %p799_p0 }
   0xa   :  { %809 = shalt.err (!%p806_p4)
}
   0xb   :  { %s850_s20 = smov [#allocation2]   ;;  %s810_s21 = scalar_lea.vmem %s47_s18, 16 }
   0xc   :  { %39 = dma.vmem_to_smem %s37_s15, 16, %s850_s20, [#allocation4]  }
   0xd   :  { %p811_p5 = scmp.ne.s32.totalorder %s47_s18, %s810_s21  ;;  %p815_p6 = scmp.lt.s32.totalorder %s47_s18, %s47_s18 }
   0xe   :  { %p816_p7 = scmp.lt.s32.totalorder %s810_s21, %s810_s21 }
  0x10   :  { %p817_p8 = por %p816_p7, %p815_p6 }
  0x12   :  { %p818_p9 = pnand %p817_p8, %p811_p5 }
  0x14   :  { %821 = shalt.err (!%p818_p9)
}
  0x15   :  { %s851_s6 = smov [#allocation5]  }
  0x16   :  { %49 = dma.vmem_to_smem %s47_s18, 16, %s851_s6, [#allocation6]  }
  0x17   :  { %844 = dma.done.wait [#allocation4], 16  }
  0x18   :  { %845 = vsyncadd [#allocation4], 4294967280 }
  0x19   :  { %846 = dma.done.wait [#allocation6], 16  }
  0x1a   :  { %847 = vsyncadd [#allocation6], 4294967280 }
  0x1b   :  { %60 = sfence }
  0x1c   :  { %v226_v0 = vld [vmem:[%s1134_s1] sm:$0xff]  ;;  %v227_v1 = vld [vmem:[%s1134_s1 + $0x8] sm:$0xff]  ;;  %v228_v2 = vld [vmem:[%s1134_s1 + $0x10] sm:$0xff]  ;;  %vm230_vm0 = vcmask 261120   ;;  %s61_s27 = sld [smem:[#allocation2]]  ;;  %s636_s17 = sld [smem:[#allocation5 + $0x1]] }
  0x1d   :  { %v743_v3 = vpack.c.bf16 %v227_v1, %v226_v0  ;;  %v229_v4 = vld [vmem:[%s1134_s1 + $0x18] sm:$0xff]  ;;  %v933_v5 = vld [vmem:[%s1141_s8] sm:$0xff]  ;;  %s935_s12 = sld [smem:[#allocation5]]  ;;  %v223_v8 = vld [vmem:[%s1133_s0 + $0x8] sm:$0xff]  ;;  %s635_s1 = sld [smem:[#allocation2 + $0x1]]  ;;  %vm199_vm1 = vcmask 1040384  }
  0x1e   :  { %v747_v6 = vpack.c.bf16 %v229_v4, %v228_v2  ;;  %707 = vmatprep.mubr.msk.f32.mxu0 %vm230_vm0, %v933_v5  ;;  %v222_v7 = vld [vmem:[%s1133_s0] sm:$0xff]  ;;  %s637_s18 = sld [smem:[#allocation2 + $0x2]]  ;;  %s947_s20 = sld [smem:[#allocation2 + $0x3]]  ;;  %v224_v10 = vld [vmem:[%s1133_s0 + $0x10] sm:$0xff]  ;;  %v225_v11 = vld [vmem:[%s1133_s0 + $0x18] sm:$0xff]  ;;  %vm201_vm2 = vcmask 1041408  }
  0x1f   :  { %744 = vmatprep.subr.bf16.mxu0 %v743_v3  ;;  %s945_s19 = sld [smem:[#allocation5 + $0x2]]  ;;  %v751_v9 = vpack.c.bf16 %v223_v8, %v222_v7  ;;  %s949_s21 = sld [smem:[#allocation5 + $0x3]]  ;;  %v972_v14 = vld [vmem:[%s1141_s8 + $0x8] sm:$0xff]  ;;  %v755_v15 = vpack.c.bf16 %v225_v11, %v224_v10  ;;  %vm203_vm3 = vcmask 1042432   ;;  %vm205_vm4 = vcmask 1043456  }
  0x20   :  { %746 = vmatpush3.bf16.msra.mxu0 %v743_v3  ;;  %s951_s6 = sld [smem:[#allocation2 + $0x4]]  ;;  %s965_s30 = sld [smem:[#allocation2 + $0x5]]  ;;  %vm207_vm5 = vcmask 1044480   ;;  %vm209_vm6 = vcmask 1045504   ;;  %vm211_vm7 = vcmask 1046528  }
  0x21   :  { %748 = vmatprep.subr.bf16.mxu0 %v747_v6  ;;  %s962_s29 = sld [smem:[#allocation5 + $0x4]]  ;;  %s967_s11 = sld [smem:[#allocation5 + $0x5]] }
  0x22   :  { %s62_s28 = scalar_lea.vmem %s1142_s9, %s61_s27  ;;  %s977_s16 = sld [smem:[#allocation2 + $0x6]]  ;;  %v71_v17 = vstv %s636_s17 }
  0x23   :  { %v63_v12 = vld [vmem:[%s62_s28] sm:$0x1]  ;;  %v65_v13 = vstv %s935_s12  ;;  %s68_s27 = scalar_lea.vmem %s1142_s9, %s635_s1  ;;  %s982_s23 = sld [smem:[#allocation5 + $0x6]] }
  0x24   :  { %750 = vmatpush3.bf16.msra.mxu0 %v747_v6  ;;  %v69_v16 = vld [vmem:[%s68_s27] sm:$0x1]  ;;  %s74_s22 = scalar_lea.vmem %s1142_s9, %s637_s18  ;;  %v66_v18 = vmul.f32 %v65_v13, %v63_v12  ;;  %s80_s24 = scalar_lea.vmem %s1142_s9, %s947_s20 }
  0x25   :  { %752 = vmatprep.subr.bf16.mxu0 %v751_v9  ;;  %v72_v19 = vmul.f32 %v71_v17, %v69_v16  ;;  %v75_v20 = vld [vmem:[%s74_s22] sm:$0x1]  ;;  %v77_v21 = vstv %s945_s19  ;;  %s989_s25 = sld [smem:[#allocation2 + $0x7]]  ;;  %v83_v24 = vstv %s949_s21  ;;  %s1001_s19 = sld [smem:[#allocation2 + $0x8]] }
  0x26   :  { %v78_v22 = vmul.f32 %v77_v21, %v75_v20  ;;  %v81_v23 = vld [vmem:[%s80_s24] sm:$0x1]  ;;  %s86_s26 = scalar_lea.vmem %s1142_s9, %s951_s6  ;;  %s998_s28 = sld [smem:[#allocation5 + $0x7]] }
  0x27   :  { %708 = vmatmul.mubr.msk.f32.vlgmr.msra.gmra.mrb[0].mxu0 %vm230_vm0, %v972_v14  ;;  %v84_v25 = vmul.f32 %v83_v24, %v81_v23  ;;  %v87_v26 = vld [vmem:[%s86_s26] sm:$0x1]  ;;  %v89_v27 = vstv %s962_s29  ;;  %v158_v28 = vrot.slane %v72_v19, 7  ;;  %s92_s13 = scalar_lea.vmem %s1142_s9, %s965_s30  ;;  %v95_v30 = vstv %s967_s11  ;;  %s1008_s6 = sld [smem:[#allocation5 + $0x8]] }
  0x28   :  { %754 = vmatpush3.bf16.msra.mxu0 %v751_v9  ;;  %v90_v29 = vmul.f32 %v89_v27, %v87_v26  ;;  %v161_v31 = vrot.slane %v78_v22, 6  ;;  %s852_s14 = smov 32   ;;  %v93_v32 = vld [vmem:[%s92_s13] sm:$0x1]  ;;  %s98_s15 = scalar_lea.vmem %s1142_s9, %s977_s16 }
  0x29   :  { %756 = vmatprep.subr.bf16.mxu0 %v755_v15  ;;  %413 = vrot.lane.b32.xlu0 %v933_v5, %s852_s14  ;;  %v164_v33 = vrot.slane %v84_v25, 5  ;;  %v200_v34 = vsel %vm199_vm1, %v66_v18, %v158_v28  ;;  %s1016_s30 = sld [smem:[#allocation2 + $0x9]]  ;;  %v96_v35 = vmul.f32 %v95_v30, %v93_v32  ;;  %v99_v36 = vld [vmem:[%s98_s15] sm:$0x1]  ;;  %v101_v37 = vstv %s982_s23  ;;  %s1027_s7 = sld [smem:[#allocation2 + $0xa]]  ;;  %v423_v30 = vld [vmem:[%s1137_s4 + $0x10] sm:$0xff] }
  0x2a   :  { %v167_v38 = vrot.slane %v90_v29, 4  ;;  %v202_v39 = vsel %vm201_vm2, %v200_v34, %v161_v31  ;;  %s1020_s11 = sld [smem:[#allocation5 + $0x9]]  ;;  %v102_v40 = vmul.f32 %v101_v37, %v99_v36  ;;  %s654_s22 = sld [smem:[#allocation5 + $0xa]]  ;;  %v421_v28 = vld [vmem:[%s1137_s4] sm:$0xff]  ;;  %v422_v29 = vld [vmem:[%s1137_s4 + $0x8] sm:$0xff]  ;;  %v424_v32 = vld [vmem:[%s1137_s4 + $0x18] sm:$0xff] }
  0x2b   :  { %s104_s12 = scalar_lea.vmem %s1142_s9, %s989_s25  ;;  %v204_v41 = vsel %vm203_vm3, %v202_v39, %v164_v33  ;;  %v170_v44 = vrot.slane %v96_v35, 3  ;;  %s110_s1 = scalar_lea.vmem %s1142_s9, %s1001_s19  ;;  %v759_v31 = vpack.c.bf16 %v422_v29, %v421_v28  ;;  %v763_v33 = vpack.c.bf16 %v424_v32, %v423_v30  ;;  %v394_v34 = vld [vmem:[%s1135_s2 + $0x8] sm:$0xff]  ;;  %v393_v35 = vld [vmem:[%s1135_s2] sm:$0xff] }
  0x2c   :  { %758 = vmatpush3.bf16.msra.mxu0 %v755_v15  ;;  %v105_v42 = vld [vmem:[%s104_s12] sm:$0x1]  ;;  %v107_v43 = vstv %s998_s28  ;;  %v206_v45 = vsel %vm205_vm4, %v204_v41, %v167_v38  ;;  %v173_v47 = vrot.slane %v102_v40, 2  ;;  %s655_s24 = sld [smem:[#allocation2 + $0xb]]  ;;  %s657_s17 = sld [smem:[#allocation2 + $0xc]] }
  0x2d   :  { %415 = vrot.lane.b32.xlu0 %v972_v14, %s852_s14  ;;  %v108_v46 = vmul.f32 %v107_v43, %v105_v42  ;;  %v208_v48 = vsel %vm207_vm5, %v206_v45, %v170_v44  ;;  %v111_v49 = vld [vmem:[%s110_s1] sm:$0x1]  ;;  %v113_v50 = vstv %s1008_s6  ;;  %s656_s25 = sld [smem:[#allocation5 + $0xb]]  ;;  %s658_s20 = sld [smem:[#allocation5 + $0xc]]  ;;  %760 = vmatprep.subr.bf16.mxu1 %v759_v31 }
  0x2e   :  { %v210_v52 = vsel %vm209_vm6, %v208_v48, %v173_v47  ;;  %s659_s21 = sld [smem:[#allocation2 + $0xd]]  ;;  %v114_v56 = vmul.f32 %v113_v50, %v111_v49  ;;  %s661_s29 = sld [smem:[#allocation2 + $0xe]]  ;;  %762 = vmatpush3.bf16.msra.mxu1 %v759_v31  ;;  %v410_v47 = vld [vmem:[%s1136_s3 + $0x8] sm:$0xff] }
  0x2f   :  { %v176_v51 = vrot.slane %v108_v46, 1  ;;  %s116_s28 = scalar_lea.vmem %s1142_s9, %s1016_s30  ;;  %s660_s19 = sld [smem:[#allocation5 + $0xd]]  ;;  %764 = vmatprep.subr.bf16.mxu1 %v763_v33  ;;  %v409_v46 = vld [vmem:[%s1136_s3] sm:$0xff] }
  0x30   :  { %v117_v53 = vld [vmem:[%s116_s28] sm:$0x1]  ;;  %v119_v54 = vstv %s1020_s11  ;;  %s122_s14 = scalar_lea.vmem %s1142_s9, %s1027_s7  ;;  %v125_v59 = vstv %s654_s22  ;;  %s662_s0 = sld [smem:[#allocation5 + $0xe]]  ;;  %v767_v48 = vpack.c.bf16 %v410_v47, %v409_v46 }
  0x31   :  { %v1045_v55 = vsel %vm211_vm7, %v210_v52, %v176_v51  ;;  %v120_v57 = vmul.f32 %v119_v54, %v117_v53  ;;  %v123_v58 = vld [vmem:[%s122_s14] sm:$0x1]  ;;  %s663_s15 = sld [smem:[#allocation2 + $0xf]]  ;;  %s853_s2 = smov 96  }
  0x32   :  { %718 = vmatprep.mubr.msk.f32.mxu0 %vm230_vm0, %v1045_v55  ;;  %v126_v60 = vmul.f32 %v125_v59, %v123_v58  ;;  %s128_s27 = scalar_lea.vmem %s1142_s9, %s655_s24  ;;  %s664_s16 = sld [smem:[#allocation5 + $0xf]]  ;;  %766 = vmatpush3.bf16.msra.mxu1 %v763_v33  ;;  %v412_v58 = vld [vmem:[%s1136_s3 + $0x18] sm:$0xff] }
  0x33   :  { %v179_v61 = vrot.slane %v120_v57, 7  ;;  %v129_v62 = vld [vmem:[%s128_s27] sm:$0x1]  ;;  %v131_v63 = vstv %s656_s25  ;;  %s134_s7 = scalar_lea.vmem %s1142_s9, %s657_s17  ;;  %v137_v2 = vstv %s658_s20  ;;  %768 = vmatprep.subr.bf16.mxu1 %v767_v48  ;;  %v411_v57 = vld [vmem:[%s1136_s3 + $0x10] sm:$0xff] }
  0x34   :  { %v132_v0 = vmul.f32 %v131_v63, %v129_v62  ;;  %v135_v1 = vld [vmem:[%s134_s7] sm:$0x1]  ;;  %v182_v3 = vrot.slane %v126_v60, 6  ;;  %s140_s1 = scalar_lea.vmem %s1142_s9, %s659_s21  ;;  %s146_s25 = scalar_lea.vmem %s1142_s9, %s661_s29  ;;  %v771_v59 = vpack.c.bf16 %v412_v58, %v411_v57 }
  0x35   :  { %v213_v4 = vsel %vm199_vm1, %v114_v56, %v179_v61  ;;  %v138_v6 = vmul.f32 %v137_v2, %v135_v1  ;;  %v143_v7 = vstv %s660_s19  ;;  %v141_v8 = vld [vmem:[%s140_s1] sm:$0x1]  ;;  %v586_v61 = vld [vmem:[%s1138_s5 + $0x8] sm:$0xff] }
  0x36   :  { %v185_v9 = vrot.slane %v132_v0, 5  ;;  %v214_v10 = vsel %vm201_vm2, %v213_v4, %v182_v3  ;;  %v144_v11 = vmul.f32 %v143_v7, %v141_v8  ;;  %v147_v12 = vld [vmem:[%s146_s25] sm:$0x1]  ;;  %v149_v13 = vstv %s662_s0  ;;  %s854_s25 = smov [#allocation7]  }
  0x37   :  { %s152_s28 = scalar_lea.vmem %s1142_s9, %s663_s15  ;;  %v188_v15 = vrot.slane %v138_v6, 4  ;;  %v150_v16 = vmul.f32 %v149_v13, %v147_v12  ;;  %v585_v62 = vld [vmem:[%s1138_s5] sm:$0xff]  ;;  %s606_s17 = sshll.u32 %s854_s25, 4  ;;  %s607_s17 = int_to_ptr.vmem [resolvable:$true] %s606_s17 }
  0x38   :  { %v153_v17 = vld [vmem:[%s152_s28] sm:$0x1]  ;;  %v155_v18 = vstv %s664_s16  ;;  %v215_v19 = vsel %vm203_vm3, %v214_v10, %v185_v9  ;;  %v191_v21 = vrot.slane %v144_v11, 3  ;;  %s822_s5 = scalar_lea.vmem %s607_s17, 256  ;;  %p827_p11 = scmp.lt.s32.totalorder %s607_s17, %s607_s17 }
  0x39   :  { %v156_v20 = vmul.f32 %v155_v18, %v153_v17  ;;  %v216_v22 = vsel %vm205_vm4, %v215_v19, %v188_v15  ;;  %v194_v23 = vrot.slane %v150_v16, 2  ;;  %p823_p10 = scmp.ne.s32.totalorder %s607_s17, %s822_s5  ;;  %p828_p12 = scmp.lt.s32.totalorder %s822_s5, %s822_s5 }
  0x3a   :  { %v217_v25 = vsel %vm207_vm5, %v216_v22, %v191_v21 }
  0x3b   :  { %v197_v24 = vrot.slane %v156_v20, 1  ;;  %v218_v26 = vsel %vm209_vm6, %v217_v25, %v194_v23  ;;  %p829_p13 = por %p828_p12, %p827_p11 }
  0x3d   :  { %v219_v27 = vsel %vm211_vm7, %v218_v26, %v197_v24  ;;  %p830_p0 = pnand %p829_p13, %p823_p10 }
  0x3e   :  { %719 = vmatmul.mubr.msk.f32.vlgmr.msra.gmra.mrb[0].mxu0 %vm230_vm0, %v219_v27 }
  0x9b   :  { %v414_v49 = vpop.permute.xlu0 %413 }
  0x9f   :  { %v416_v53 = vpop.permute.xlu0 %415 }
 0x111   :  { %v720_v36 = vpop.f32.mrb[0].mxu0 }
 0x112   :  { %v396_v37 = vadd.f32 %v720_v36, %v394_v34  ;;  %v384_v38 = vpop.f32.mrb[1].mxu0 }
 0x113   :  { %v395_v39 = vadd.f32 %v393_v35, %v384_v38 }
 0x114   :  { %v670_v40 = vmul.f32 -1.442695, %v396_v37 }
 0x115   :  { %v669_v41 = vmul.f32 -1.442695, %v395_v39 }
 0x116   :  { %786 = vpow2.f32 %v670_v40 }
 0x117   :  { %788 = vpow2.f32 %v669_v41 }
 0x120   :  { %v787_v42 = vpop.eup %786 }
 0x121   :  { %v789_v43 = vpop.eup %788  ;;  %v404_v44 = vadd.f32 1.0, %v787_v42 }
 0x122   :  { %v403_v45 = vadd.f32 1.0, %v789_v43 }
 0x124   :  { %790 = vrcp.f32 %v403_v45 }
 0x125   :  { %792 = vrcp.f32 %v404_v44 }
 0x12e   :  { %v791_v50 = vpop.eup %790 }
 0x12f   :  { %v419_v51 = vmul.f32 %v791_v50, %v414_v49  ;;  %v793_v52 = vpop.eup %792 }
 0x130   :  { %v420_v54 = vmul.f32 %v793_v52, %v416_v53  ;;  %v592_v3 = vsub.f32 1.0, %v793_v52 }
 0x131   :  { %427 = vrot.lane.b32.xlu1 %v419_v51, %s853_s2 }
 0x132   :  { %v594_v7 = vmul.f32 %v592_v3, %v972_v14 }
 0x135   :  { %429 = vrot.lane.b32.xlu1 %v420_v54, %s853_s2 }
 0x1a3   :  { %v428_v56 = vpop.permute.xlu1 %427 }
 0x1a4   :  { %729 = vmatprep.mubr.msk.f32.mxu1 %vm230_vm0, %v428_v56 }
 0x1a7   :  { %v430_v60 = vpop.permute.xlu1 %429 }
 0x1a8   :  { %730 = vmatmul.mubr.msk.f32.vlgmr.msra.gmra.mrb[0].mxu1 %vm230_vm0, %v430_v60 }
 0x1a9   :  { %770 = vmatpush3.bf16.msra.mxu1 %v767_v48  ;;  %740 = vmatprep.mubr.msk.f32.mxu1 %vm230_vm0, %v1045_v55  ;;  %v591_v55 = vsub.f32 1.0, %v791_v50 }
 0x1aa   :  { %772 = vmatprep.subr.bf16.mxu1 %v771_v59 }
 0x1ab   :  { %v593_v9 = vmul.f32 %v591_v55, %v933_v5 }
 0x1ad   :  { %774 = vmatpush3.bf16.msra.mxu1 %v771_v59 }
 0x1b0   :  { %741 = vmatmul.mubr.msk.f32.vlgmr.msra.gmra.mrb[0].mxu1 %vm230_vm0, %v219_v27 }
 0x283   :  { %v742_v63 = vpop.f32.mrb[0].mxu1 }
 0x284   :  { %v588_v0 = vadd.f32 %v742_v63, %v586_v61  ;;  %v576_v1 = vpop.f32.mrb[1].mxu1 }
 0x285   :  { %v587_v2 = vadd.f32 %v585_v62, %v576_v1 }
 0x286   :  { %794 = vtanh.f32 %v588_v0 }
 0x287   :  { %796 = vtanh.f32 %v587_v2 }
 0x290   :  { %v795_v4 = vpop.eup %794 }
 0x291   :  { %v797_v6 = vpop.eup %796  ;;  %v596_v8 = vmul.f32 %v795_v4, %v793_v52 }
 0x292   :  { %v595_v10 = vmul.f32 %v797_v6, %v791_v50 }
 0x293   :  { %v598_v11 = vadd.f32 %v596_v8, %v594_v7 }
 0x294   :  { %v597_v12 = vadd.f32 %v595_v10, %v593_v9 }
 0x295   :  { %600 = vst.msk [vmem:[#allocation7 + $0x8] sm:$0xff] %vm230_vm0, %v598_v11 }
 0x296   :  { %599 = vst.msk [vmem:[#allocation7] sm:$0xff] %vm230_vm0, %v597_v12 }
 0x297   :  { %833 = shalt.err (!%p830_p0)
}
 0x298   :  { %s834_s9 = scalar_lea.hbm %s1143_s10, 256 }
 0x299   :  { %p835_p1 = scmp.ne.s32.totalorder %s1143_s10, %s834_s9  ;;  %p838_p2 = scmp.lt.u32.totalorder %s834_s9, %s1143_s10 }
 0x29b   :  { %p840_p3 = pnand %p838_p2, %p835_p1 }
 0x29d   :  { %843 = shalt.err (!%p840_p3)
}
 0x29e   :  { %s855_s6 = smov 128   ;;  %s856_s14 = smov 8  }
 0x29f   :  { %612 = dma.vmem_to_hbm [thread:$0]  %s607_s17, 256, %s1143_s10, [#allocation3], %s855_s6, %s855_s6, %s856_s14  }
 0x2a0   :  { %848 = dma.done.wait [#allocation3], 256  }
 0x2a1   :  { %849 = vsyncadd [#allocation3], 4294967040 }
 0x2a2   :  { %616 = vsyncpa [#allocation3], 1 }
 0x2a3   :  { %617 = vsyncpa [#allocation4], 1 }
 0x2a4   :  { %618 = vsyncpa [#allocation6], 1 }

</bundles_post_ra>
